<compile_context>
chip_gen: v5e
topology: v5e:2x2
jax: 0.10.0
libtpu: 0.0.40
codegen_flags: <defaults>
</compile_context>

<pallas_src>
import functools

import numpy as np

import jax
import jax.numpy as jnp
from jax.experimental import pallas as pl
from jax.experimental.pallas import tpu as pltpu


# ----------------------------------------------------------------------------
# Fused kernel: conv1(3x3, pad=1, stride) + BN1 + ReLU + conv2(3x3, pad=1) + BN2
# for one batch element.
# ----------------------------------------------------------------------------
def _base_block_kernel(x_ref, w1_ref, w2_ref, s1_ref, b1_ref, s2_ref, b2_ref,
                       o_ref, xpad_ref, mid_ref, *, stride):
    # x_ref  : (1, H,  W*Cin)          input, channels-last flattened width
    # w1_ref : (3, W*Cin,  Wo*Cmid)    banded conv1 weights (per kh)
    # w2_ref : (3, Wo*Cmid, Wo*Cout)   banded conv2 weights (per kh)
    # s*/b*  : (1, Wo*C*)              folded BN scale / bias, tiled over width
    # o_ref  : (1, Ho, Wo*Cout)        lane-dense output
    # xpad_ref : VMEM (H+16,  W*Cin)   vertically zero-padded input
    # mid_ref  : VMEM (Ho+16, Wo*Cmid) vertically zero-padded intermediate
    _, ho, _ = o_ref.shape
    h_in = x_ref.shape[1]

    # ---- vertically pad the input in VMEM (8-aligned interior store) -------
    xpad_ref[...] = jnp.zeros_like(xpad_ref)
    xpad_ref[8:8 + h_in, :] = x_ref[0]
    xp = xpad_ref[...]                                   # (H+16, W*Cin)

    # ---- conv1 + BN1 + ReLU: 3 lane-dense matmuls ---------------------------
    # padded row index p lives at scratch row 7 + p; tap kh reads rows
    # 7 + kh + stride*h for output row h.
    y1 = jnp.zeros((ho, w1_ref.shape[2]), jnp.float32)
    for kh in range(3):
        rows = xp[7 + kh:7 + kh + (ho - 1) * stride + 1:stride, :]
        y1 = y1 + jnp.dot(rows, w1_ref[kh],
                          preferred_element_type=jnp.float32)
    y1 = jnp.maximum(y1 * s1_ref[0] + b1_ref[0], 0.0)    # (Ho, Wo*Cmid)

    # ---- conv2 + BN2 (stride 1), intermediate stays in VMEM ----------------
    mid_ref[...] = jnp.zeros_like(mid_ref)
    mid_ref[8:8 + ho, :] = y1
    mid = mid_ref[...]                                   # (Ho+16, Wo*Cmid)

    y2 = jnp.zeros((ho, o_ref.shape[2]), jnp.float32)
    for kh in range(3):
        y2 = y2 + jnp.dot(mid[7 + kh:7 + kh + ho, :], w2_ref[kh],
                          preferred_element_type=jnp.float32)

    o_ref[0] = (y2 * s2_ref[0] + b2_ref[0]).astype(o_ref.dtype)


# ----------------------------------------------------------------------------
# Parameter folding (one-time, model-load-style preprocessing).
# ----------------------------------------------------------------------------
def _band_conv_weight(w_hwio, w_in, w_out, stride):
    """Fold a 3x3 conv's width taps + horizontal zero padding into a banded
    matrix per kernel row kh.

    Returns band of shape (3, w_in*cin, w_out*cout) such that
      out[h, w*cout + co] = sum_kh rows_kh[h] @ band[kh]
    where rows_kh[h] is the (vertically padded) input row h*stride + kh
    flattened as (w_in*cin,).
    """
    w_np = np.asarray(jax.device_get(w_hwio)).astype(np.float32)
    _, _, cin, cout = w_np.shape
    band = np.zeros((3, w_in * cin, w_out * cout), np.float32)
    for kh in range(3):
        for kw in range(3):
            for w in range(w_out):
                w_src = w * stride + kw - 1          # unpadded input column
                if 0 <= w_src < w_in:                # out-of-range == zero pad
                    band[kh,
                         w_src * cin:(w_src + 1) * cin,
                         w * cout:(w + 1) * cout] = w_np[kh, kw]
    return jnp.asarray(band)


def fold_base_params(params, h, w, stride, eps=1e-5):
    """Fold BN into scale/bias and band the conv weights for the kernel."""
    cmid = params["w1"].shape[3]
    cout = params["w2"].shape[3]
    wo = (w + 2 - 3) // stride + 1

    s1 = params["bn1_gamma"] / jnp.sqrt(params["bn1_var"] + eps)
    b1 = params["bn1_beta"] - params["bn1_mean"] * s1
    s2 = params["bn2_gamma"] / jnp.sqrt(params["bn2_var"] + eps)
    b2 = params["bn2_beta"] - params["bn2_mean"] * s2

    return {
        "w1b": _band_conv_weight(params["w1"], w, wo, stride),
        "w2b": _band_conv_weight(params["w2"], wo, wo, 1),
        "s1": jnp.tile(s1, wo).reshape(1, wo * cmid).astype(jnp.float32),
        "b1": jnp.tile(b1, wo).reshape(1, wo * cmid).astype(jnp.float32),
        "s2": jnp.tile(s2, wo).reshape(1, wo * cout).astype(jnp.float32),
        "b2": jnp.tile(b2, wo).reshape(1, wo * cout).astype(jnp.float32),
    }


# ----------------------------------------------------------------------------
# Forward pass: out = BN2(conv2(relu(BN1(conv1(x)))))   (matches PyTorch Base)
# ----------------------------------------------------------------------------
def base_block_forward(x_nchw, folded, *, stride=1):
    n, cin, h, w = x_nchw.shape
    ho = (h + 2 - 3) // stride + 1
    wo = (w + 2 - 3) // stride + 1
    cmid = folded["w1b"].shape[2] // wo
    cout = folded["w2b"].shape[2] // wo

    # NCHW -> (N, H, W*Cin) channels-last lane-dense layout (single XLA copy).
    x = jnp.transpose(x_nchw, (0, 2, 3, 1)).reshape(n, h, w * cin)

    out = pl.pallas_call(
        functools.partial(_base_block_kernel, stride=stride),
        out_shape=jax.ShapeDtypeStruct((n, ho, wo * cout), jnp.float32),
        grid_spec=pltpu.PrefetchScalarGridSpec(
            num_scalar_prefetch=0,
            grid=(n,),
            in_specs=[
                pl.BlockSpec((1, h, w * cin), lambda b: (b, 0, 0)),
                pl.BlockSpec((3, w * cin, wo * cmid), lambda b: (0, 0, 0)),
                pl.BlockSpec((3, wo * cmid, wo * cout), lambda b: (0, 0, 0)),
                pl.BlockSpec((1, wo * cmid), lambda b: (0, 0)),
                pl.BlockSpec((1, wo * cmid), lambda b: (0, 0)),
                pl.BlockSpec((1, wo * cout), lambda b: (0, 0)),
                pl.BlockSpec((1, wo * cout), lambda b: (0, 0)),
            ],
            out_specs=pl.BlockSpec((1, ho, wo * cout), lambda b: (b, 0, 0)),
            scratch_shapes=[
                pltpu.VMEM((h + 16, w * cin), jnp.float32),
                pltpu.VMEM((ho + 16, wo * cmid), jnp.float32),
            ],
        ),
        compiler_params=pltpu.CompilerParams(
            dimension_semantics=("parallel",)),
    )(x, folded["w1b"], folded["w2b"], folded["s1"], folded["b1"],
      folded["s2"], folded["b2"])

    out = out.reshape(n, ho, wo, cout)
    return jnp.transpose(out, (0, 3, 1, 2))               # -> NCHW


_base_block_forward_jit = jax.jit(base_block_forward, static_argnames="stride")


# ----------------------------------------------------------------------------
# Pure-JAX reference (correctness check).
# ----------------------------------------------------------------------------
def _ref_conv_bn(x_nhwc, w_hwio, gamma, beta, mean, var, *, stride, relu,
                 eps=1e-5):
    y = jax.lax.conv_general_dilated(
        x_nhwc, w_hwio, window_strides=(stride, stride),
        padding=((1, 1), (1, 1)),
        dimension_numbers=("NHWC", "HWIO", "NHWC"))
    scale = gamma / jnp.sqrt(var + eps)
    y = y * scale + (beta - mean * scale)
    if relu:
        y = jnp.maximum(y, 0.0)
    return y


def base_block_ref(x_nchw, params, stride=1):
    x = jnp.transpose(x_nchw, (0, 2, 3, 1))
    out = _ref_conv_bn(x, params["w1"], params["bn1_gamma"], params["bn1_beta"],
                       params["bn1_mean"], params["bn1_var"],
                       stride=stride, relu=True)
    out = _ref_conv_bn(out, params["w2"], params["bn2_gamma"],
                       params["bn2_beta"], params["bn2_mean"],
                       params["bn2_var"], stride=1, relu=False)
    return jnp.transpose(out, (0, 3, 1, 2))


# ----------------------------------------------------------------------------
# Main
# ----------------------------------------------------------------------------
if __name__ == "__main__":
    # Base(in_planes=4, planes=8, stride=1), input (N=2, C=4, H=16, W=16) NCHW.
    in_planes, planes, stride = 4, 8, 1
    N, H, W = 2, 16, 16

    key = jax.random.PRNGKey(0)
    k = jax.random.split(key, 8)

    params = {
        "w1": 0.1 * jax.random.normal(k[0], (3, 3, in_planes, planes), jnp.float32),
        "w2": 0.1 * jax.random.normal(k[1], (3, 3, planes, planes), jnp.float32),
        "bn1_gamma": 1.0 + 0.1 * jax.random.normal(k[2], (planes,), jnp.float32),
        "bn1_beta": 0.1 * jax.random.normal(k[3], (planes,), jnp.float32),
        "bn1_mean": 0.05 * jax.random.normal(k[4], (planes,), jnp.float32),
        "bn1_var": jnp.abs(1.0 + 0.1 * jax.random.normal(k[5], (planes,), jnp.float32)),
        "bn2_gamma": 1.0 + 0.1 * jax.random.normal(k[6], (planes,), jnp.float32),
        "bn2_beta": 0.1 * jax.random.normal(k[7], (planes,), jnp.float32),
        "bn2_mean": jnp.zeros((planes,), jnp.float32),
        "bn2_var": jnp.ones((planes,), jnp.float32),
    }

    x = jax.random.normal(jax.random.PRNGKey(42), (N, in_planes, H, W), jnp.float32)

    folded = fold_base_params(params, H, W, stride)
    out = jax.block_until_ready(_base_block_forward_jit(x, folded, stride=stride))

    ref = jax.block_until_ready(base_block_ref(x, params, stride=stride))

    assert out.shape == (N, planes, H, W), out.shape
    assert jnp.allclose(out, ref, rtol=1e-4, atol=1e-4), float(
        jnp.max(jnp.abs(out - ref)))

    print("KERNEL_OK")
</pallas_src>

<mosaic_0001>
module attributes {stable_mosaic.version = 11 : i64} {
  func.func @_base_block_kernel(%arg0: i32, %arg1: memref<1x16x64xf32, #tpu.memory_space<vmem>>, %arg2: memref<3x64x128xf32, #tpu.memory_space<vmem>>, %arg3: memref<3x128x128xf32, #tpu.memory_space<vmem>>, %arg4: memref<1x128xf32, #tpu.memory_space<vmem>>, %arg5: memref<1x128xf32, #tpu.memory_space<vmem>>, %arg6: memref<1x128xf32, #tpu.memory_space<vmem>>, %arg7: memref<1x128xf32, #tpu.memory_space<vmem>>, %arg8: memref<1x16x128xf32, #tpu.memory_space<vmem>>, %arg9: memref<32x64xf32, #tpu.memory_space<vmem>>, %arg10: memref<32x128xf32, #tpu.memory_space<vmem>>) attributes {dimension_semantics = [#tpu.dimension_semantics<parallel>], iteration_bounds = array<i64: 2>, scalar_prefetch = 0 : i64, scratch_operands = 2 : i64, tpu.core_type = #tpu.core_type<tc>, window_params = [{transform_indices = @transform_0, window_bounds = array<i64: 1, 16, 64>}, {pipeline_mode = #tpu.pipeline_mode<synchronous>, transform_indices = @transform_1, window_bounds = array<i64: 3, 64, 128>}, {pipeline_mode = #tpu.pipeline_mode<synchronous>, transform_indices = @transform_2, window_bounds = array<i64: 3, 128, 128>}, {pipeline_mode = #tpu.pipeline_mode<synchronous>, transform_indices = @transform_3, window_bounds = array<i64: 1, 128>}, {pipeline_mode = #tpu.pipeline_mode<synchronous>, transform_indices = @transform_4, window_bounds = array<i64: 1, 128>}, {pipeline_mode = #tpu.pipeline_mode<synchronous>, transform_indices = @transform_5, window_bounds = array<i64: 1, 128>}, {pipeline_mode = #tpu.pipeline_mode<synchronous>, transform_indices = @transform_6, window_bounds = array<i64: 1, 128>}, {transform_indices = @transform_7, window_bounds = array<i64: 1, 16, 128>}]} {
    %cst = arith.constant 0.000000e+00 : f32
    %0 = vector.broadcast %cst : f32 to vector<32x64xf32>
    %c0 = arith.constant 0 : index
    %c0_0 = arith.constant 0 : index
    %1 = vector.load %arg9[%c0, %c0_0] : memref<32x64xf32, #tpu.memory_space<vmem>>, vector<32x64xf32>
    tpu.vector_store %arg9[%c0, %c0_0], %0 {strides = array<i32>} : memref<32x64xf32, #tpu.memory_space<vmem>>, vector<32x64xf32>,
    %c0_1 = arith.constant 0 : index
    %c0_2 = arith.constant 0 : index
    %c0_3 = arith.constant 0 : index
    %2 = vector.load %arg1[%c0_1, %c0_2, %c0_3] : memref<1x16x64xf32, #tpu.memory_space<vmem>>, vector<1x16x64xf32>
    %3 = vector.shape_cast %2 : vector<1x16x64xf32> to vector<16x64xf32>
    %c8 = arith.constant 8 : index
    %c0_4 = arith.constant 0 : index
    %4 = vector.load %arg9[%c8, %c0_4] : memref<32x64xf32, #tpu.memory_space<vmem>>, vector<16x64xf32>
    tpu.vector_store %arg9[%c8, %c0_4], %3 {strides = array<i32>} : memref<32x64xf32, #tpu.memory_space<vmem>>, vector<16x64xf32>,
    %c0_5 = arith.constant 0 : index
    %c0_6 = arith.constant 0 : index
    %5 = vector.load %arg9[%c0_5, %c0_6] : memref<32x64xf32, #tpu.memory_space<vmem>>, vector<32x64xf32>
    %cst_7 = arith.constant 0.000000e+00 : f32
    %6 = vector.broadcast %cst_7 : f32 to vector<16x128xf32>
    %7 = vector.extract_strided_slice %5 {offsets = [7, 0], sizes = [16, 64], strides = [1, 1]} : vector<32x64xf32> to vector<16x64xf32>
    %c0_8 = arith.constant 0 : index
    %c0_9 = arith.constant 0 : index
    %c0_10 = arith.constant 0 : index
    %8 = vector.load %arg2[%c0_8, %c0_9, %c0_10] : memref<3x64x128xf32, #tpu.memory_space<vmem>>, vector<1x64x128xf32>
    %9 = vector.shape_cast %8 : vector<1x64x128xf32> to vector<64x128xf32>
    %cst_11 = arith.constant dense<0.000000e+00> : vector<16x128xf32>
    %10 = tpu.matmul %7, %9, %cst_11 {dimension_numbers = #tpu.dot_dimension_numbers<[1], [0], [0], [1], [0, 0, 1, 1], [], []>} : vector<16x64xf32>, vector<64x128xf32>, vector<16x128xf32> -> vector<16x128xf32>
    %11 = arith.addf %6, %10 : vector<16x128xf32>
    %12 = vector.extract_strided_slice %5 {offsets = [8, 0], sizes = [16, 64], strides = [1, 1]} : vector<32x64xf32> to vector<16x64xf32>
    %c1 = arith.constant 1 : index
    %c0_12 = arith.constant 0 : index
    %c0_13 = arith.constant 0 : index
    %13 = vector.load %arg2[%c1, %c0_12, %c0_13] : memref<3x64x128xf32, #tpu.memory_space<vmem>>, vector<1x64x128xf32>
    %14 = vector.shape_cast %13 : vector<1x64x128xf32> to vector<64x128xf32>
    %cst_14 = arith.constant dense<0.000000e+00> : vector<16x128xf32>
    %15 = tpu.matmul %12, %14, %cst_14 {dimension_numbers = #tpu.dot_dimension_numbers<[1], [0], [0], [1], [0, 0, 1, 1], [], []>} : vector<16x64xf32>, vector<64x128xf32>, vector<16x128xf32> -> vector<16x128xf32>
    %16 = arith.addf %11, %15 : vector<16x128xf32>
    %17 = vector.extract_strided_slice %5 {offsets = [9, 0], sizes = [16, 64], strides = [1, 1]} : vector<32x64xf32> to vector<16x64xf32>
    %c2 = arith.constant 2 : index
    %c0_15 = arith.constant 0 : index
    %c0_16 = arith.constant 0 : index
    %18 = vector.load %arg2[%c2, %c0_15, %c0_16] : memref<3x64x128xf32, #tpu.memory_space<vmem>>, vector<1x64x128xf32>
    %19 = vector.shape_cast %18 : vector<1x64x128xf32> to vector<64x128xf32>
    %cst_17 = arith.constant dense<0.000000e+00> : vector<16x128xf32>
    %20 = tpu.matmul %17, %19, %cst_17 {dimension_numbers = #tpu.dot_dimension_numbers<[1], [0], [0], [1], [0, 0, 1, 1], [], []>} : vector<16x64xf32>, vector<64x128xf32>, vector<16x128xf32> -> vector<16x128xf32>
    %21 = arith.addf %16, %20 : vector<16x128xf32>
    %c0_18 = arith.constant 0 : index
    %c0_19 = arith.constant 0 : index
    %22 = vector.load %arg4[%c0_18, %c0_19] : memref<1x128xf32, #tpu.memory_space<vmem>>, vector<1x128xf32>
    %23 = vector.shape_cast %22 : vector<1x128xf32> to vector<128xf32>
    %24 = vector.shape_cast %23 : vector<128xf32> to vector<1x128xf32>
    %25 = vector.broadcast %24 : vector<1x128xf32> to vector<16x128xf32>
    %26 = arith.mulf %21, %25 : vector<16x128xf32>
    %c0_20 = arith.constant 0 : index
    %c0_21 = arith.constant 0 : index
    %27 = vector.load %arg5[%c0_20, %c0_21] : memref<1x128xf32, #tpu.memory_space<vmem>>, vector<1x128xf32>
    %28 = vector.shape_cast %27 : vector<1x128xf32> to vector<128xf32>
    %29 = vector.shape_cast %28 : vector<128xf32> to vector<1x128xf32>
    %30 = vector.broadcast %29 : vector<1x128xf32> to vector<16x128xf32>
    %31 = arith.addf %26, %30 : vector<16x128xf32>
    %cst_22 = arith.constant 0.000000e+00 : f32
    %32 = vector.broadcast %cst_22 : f32 to vector<16x128xf32>
    %33 = arith.maximumf %31, %32 : vector<16x128xf32>
    %cst_23 = arith.constant 0.000000e+00 : f32
    %34 = vector.broadcast %cst_23 : f32 to vector<32x128xf32>
    %c0_24 = arith.constant 0 : index
    %c0_25 = arith.constant 0 : index
    %35 = vector.load %arg10[%c0_24, %c0_25] : memref<32x128xf32, #tpu.memory_space<vmem>>, vector<32x128xf32>
    tpu.vector_store %arg10[%c0_24, %c0_25], %34 {strides = array<i32>} : memref<32x128xf32, #tpu.memory_space<vmem>>, vector<32x128xf32>,
    %c8_26 = arith.constant 8 : index
    %c0_27 = arith.constant 0 : index
    %36 = vector.load %arg10[%c8_26, %c0_27] : memref<32x128xf32, #tpu.memory_space<vmem>>, vector<16x128xf32>
    tpu.vector_store %arg10[%c8_26, %c0_27], %33 {strides = array<i32>} : memref<32x128xf32, #tpu.memory_space<vmem>>, vector<16x128xf32>,
    %c0_28 = arith.constant 0 : index
    %c0_29 = arith.constant 0 : index
    %37 = vector.load %arg10[%c0_28, %c0_29] : memref<32x128xf32, #tpu.memory_space<vmem>>, vector<32x128xf32>
    %cst_30 = arith.constant 0.000000e+00 : f32
    %38 = vector.broadcast %cst_30 : f32 to vector<16x128xf32>
    %39 = vector.extract_strided_slice %37 {offsets = [7, 0], sizes = [16, 128], strides = [1, 1]} : vector<32x128xf32> to vector<16x128xf32>
    %c0_31 = arith.constant 0 : index
    %c0_32 = arith.constant 0 : index
    %c0_33 = arith.constant 0 : index
    %40 = vector.load %arg3[%c0_31, %c0_32, %c0_33] : memref<3x128x128xf32, #tpu.memory_space<vmem>>, vector<1x128x128xf32>
    %41 = vector.shape_cast %40 : vector<1x128x128xf32> to vector<128x128xf32>
    %cst_34 = arith.constant dense<0.000000e+00> : vector<16x128xf32>
    %42 = tpu.matmul %39, %41, %cst_34 {dimension_numbers = #tpu.dot_dimension_numbers<[1], [0], [0], [1], [0, 0, 1, 1], [], []>} : vector<16x128xf32>, vector<128x128xf32>, vector<16x128xf32> -> vector<16x128xf32>
    %43 = arith.addf %38, %42 : vector<16x128xf32>
    %44 = vector.extract_strided_slice %37 {offsets = [8, 0], sizes = [16, 128], strides = [1, 1]} : vector<32x128xf32> to vector<16x128xf32>
    %c1_35 = arith.constant 1 : index
    %c0_36 = arith.constant 0 : index
    %c0_37 = arith.constant 0 : index
    %45 = vector.load %arg3[%c1_35, %c0_36, %c0_37] : memref<3x128x128xf32, #tpu.memory_space<vmem>>, vector<1x128x128xf32>
    %46 = vector.shape_cast %45 : vector<1x128x128xf32> to vector<128x128xf32>
    %cst_38 = arith.constant dense<0.000000e+00> : vector<16x128xf32>
    %47 = tpu.matmul %44, %46, %cst_38 {dimension_numbers = #tpu.dot_dimension_numbers<[1], [0], [0], [1], [0, 0, 1, 1], [], []>} : vector<16x128xf32>, vector<128x128xf32>, vector<16x128xf32> -> vector<16x128xf32>
    %48 = arith.addf %43, %47 : vector<16x128xf32>
    %49 = vector.extract_strided_slice %37 {offsets = [9, 0], sizes = [16, 128], strides = [1, 1]} : vector<32x128xf32> to vector<16x128xf32>
    %c2_39 = arith.constant 2 : index
    %c0_40 = arith.constant 0 : index
    %c0_41 = arith.constant 0 : index
    %50 = vector.load %arg3[%c2_39, %c0_40, %c0_41] : memref<3x128x128xf32, #tpu.memory_space<vmem>>, vector<1x128x128xf32>
    %51 = vector.shape_cast %50 : vector<1x128x128xf32> to vector<128x128xf32>
    %cst_42 = arith.constant dense<0.000000e+00> : vector<16x128xf32>
    %52 = tpu.matmul %49, %51, %cst_42 {dimension_numbers = #tpu.dot_dimension_numbers<[1], [0], [0], [1], [0, 0, 1, 1], [], []>} : vector<16x128xf32>, vector<128x128xf32>, vector<16x128xf32> -> vector<16x128xf32>
    %53 = arith.addf %48, %52 : vector<16x128xf32>
    %c0_43 = arith.constant 0 : index
    %c0_44 = arith.constant 0 : index
    %54 = vector.load %arg6[%c0_43, %c0_44] : memref<1x128xf32, #tpu.memory_space<vmem>>, vector<1x128xf32>
    %55 = vector.shape_cast %54 : vector<1x128xf32> to vector<128xf32>
    %56 = vector.shape_cast %55 : vector<128xf32> to vector<1x128xf32>
    %57 = vector.broadcast %56 : vector<1x128xf32> to vector<16x128xf32>
    %58 = arith.mulf %53, %57 : vector<16x128xf32>
    %c0_45 = arith.constant 0 : index
    %c0_46 = arith.constant 0 : index
    %59 = vector.load %arg7[%c0_45, %c0_46] : memref<1x128xf32, #tpu.memory_space<vmem>>, vector<1x128xf32>
    %60 = vector.shape_cast %59 : vector<1x128xf32> to vector<128xf32>
    %61 = vector.shape_cast %60 : vector<128xf32> to vector<1x128xf32>
    %62 = vector.broadcast %61 : vector<1x128xf32> to vector<16x128xf32>
    %63 = arith.addf %58, %62 : vector<16x128xf32>
    %c0_47 = arith.constant 0 : index
    %c0_48 = arith.constant 0 : index
    %c0_49 = arith.constant 0 : index
    %64 = vector.load %arg8[%c0_47, %c0_48, %c0_49] : memref<1x16x128xf32, #tpu.memory_space<vmem>>, vector<1x16x128xf32>
    %65 = vector.shape_cast %64 : vector<1x16x128xf32> to vector<16x128xf32>
    %66 = vector.shape_cast %63 : vector<16x128xf32> to vector<1x16x128xf32>
    tpu.vector_store %arg8[%c0_47, %c0_48, %c0_49], %66 {strides = array<i32>} : memref<1x16x128xf32, #tpu.memory_space<vmem>>, vector<1x16x128xf32>,
    return
  }
  func.func @transform_0(%arg0: i32) -> (i32, i32, i32) {
    %c0_i32 = arith.constant 0 : i32
    %c0_i32_0 = arith.constant 0 : i32
    %c0_i32_1 = arith.constant 0 : i32
    return %arg0, %c0_i32, %c0_i32_0 : i32, i32, i32
  }
  func.func @transform_1(%arg0: i32) -> (i32, i32, i32) {
    %c0_i32 = arith.constant 0 : i32
    %c0_i32_0 = arith.constant 0 : i32
    %c0_i32_1 = arith.constant 0 : i32
    %c0_i32_2 = arith.constant 0 : i32
    return %c0_i32, %c0_i32_0, %c0_i32_1 : i32, i32, i32
  }
  func.func @transform_2(%arg0: i32) -> (i32, i32, i32) {
    %c0_i32 = arith.constant 0 : i32
    %c0_i32_0 = arith.constant 0 : i32
    %c0_i32_1 = arith.constant 0 : i32
    %c0_i32_2 = arith.constant 0 : i32
    return %c0_i32, %c0_i32_0, %c0_i32_1 : i32, i32, i32
  }
  func.func @transform_3(%arg0: i32) -> (i32, i32) {
    %c0_i32 = arith.constant 0 : i32
    %c0_i32_0 = arith.constant 0 : i32
    %c0_i32_1 = arith.constant 0 : i32
    return %c0_i32, %c0_i32_0 : i32, i32
  }
  func.func @transform_4(%arg0: i32) -> (i32, i32) {
    %c0_i32 = arith.constant 0 : i32
    %c0_i32_0 = arith.constant 0 : i32
    %c0_i32_1 = arith.constant 0 : i32
    return %c0_i32, %c0_i32_0 : i32, i32
  }
  func.func @transform_5(%arg0: i32) -> (i32, i32) {
    %c0_i32 = arith.constant 0 : i32
    %c0_i32_0 = arith.constant 0 : i32
    %c0_i32_1 = arith.constant 0 : i32
    return %c0_i32, %c0_i32_0 : i32, i32
  }
  func.func @transform_6(%arg0: i32) -> (i32, i32) {
    %c0_i32 = arith.constant 0 : i32
    %c0_i32_0 = arith.constant 0 : i32
    %c0_i32_1 = arith.constant 0 : i32
    return %c0_i32, %c0_i32_0 : i32, i32
  }
  func.func @transform_7(%arg0: i32) -> (i32, i32, i32) {
    %c0_i32 = arith.constant 0 : i32
    %c0_i32_0 = arith.constant 0 : i32
    %c0_i32_1 = arith.constant 0 : i32
    return %arg0, %c0_i32, %c0_i32_0 : i32, i32, i32
  }
}

</mosaic_0001>

<bundles_post_ra>
// kernel: base_block_forward.1
= control target key start
LH: loop header
LB: loop body
LE: loop exit
PB: predicated region body
PF: predicated region fallthrough
CT: control target
= control target key end

     0   :  { %12 = vsyncpa [#allocation5], 0  ;;  %s843_s24 = smov 0   ;;  %s1052_s0 = inlined_call_operand.vmem [shape: f32[2,16,64], index: 0, kind: input, shape index: {}]   ;;  %s1053_s1 = inlined_call_operand.hbm [shape: f32[3,64,128], index: 1, kind: input, shape index: {}]   ;;  %s1054_s2 = inlined_call_operand.vmem [shape: f32[3,128,128], index: 2, kind: input, shape index: {}]   ;;  %s1055_s3 = inlined_call_operand.vmem [shape: f32[1,128], index: 3, kind: input, shape index: {}]   ;;  %s1056_s4 = inlined_call_operand.vmem [shape: f32[1,128], index: 4, kind: input, shape index: {}]   ;;  %s1057_s5 = inlined_call_operand.vmem [shape: f32[1,128], index: 5, kind: input, shape index: {}]   ;;  %s1058_s6 = inlined_call_operand.vmem [shape: f32[1,128], index: 6, kind: input, shape index: {}]   ;;  %s1059_s7 = inlined_call_operand.vmem [shape: f32[2,16,128], index: 7, kind: output, shape index: {}]  }
   0x1 LB: > { %s212_s27 = sshll.u32 %s1053_s1, 4  ;;  %s678_s28 = sadd.s32 4294967295, %s797_s24   ;;  %s797_s24 = sphi %s843_s24, %s18_s24   ;;  %s213_s27 = int_to_ptr.hbm [resolvable:$true] %s212_s27 }
   0x2   : > { %p680_p0 = scmp.ge.s32.totalorder %s797_s24, 1  ;;  %p201_p1 = scmp.lt.s32.totalorder %s797_s24, 3 }
   0x3   : > { %p739_p2 = scmp.eq.s32.totalorder %s678_s28, 0  ;;  %s799_s29 = smov [#allocation4]  }
   0x4   : > { %p202_p3 = pnand %p680_p0, %p201_p1  ;;  %s214_s30 = sshll.u32 %s799_s29, 4  ;;  %s215_s30 = int_to_ptr.vmem [resolvable:$true] %s214_s30 }
   0x5   : > { %s800_s8 = smov 128   ;;  %s801_s9 = smov 8  }
   0x6   : > { %p735_p4 = pneg %p202_p3  ;;  %253 = sbr.rel (%p202_p3) target bundleno = 336 (0x150), region = 48 }
   0x8   : > { %p736_p5 = pnand %p739_p2, %p735_p4 }
   0xa   : > { %738 = dma.hbm_to_vmem [thread:$0]  (!%p736_p5), %s213_s27, 3072, %s215_s30, [#allocation5], %s800_s8, %s800_s8, %s801_s9  }
   0xb   : > { %792 = dma.done.wait (%p739_p2), [#allocation5], 3072  }
   0xc   : > { %794 = vsyncadd (%p739_p2), [#allocation5], 4294964224  ;;  %p286_p6 = scmp.lt.s32.totalorder %s678_s28, 1  ;;  %vm296_vm0 = vcmask 523264   ;;  %v802_v0 = vmov 0.0   ;;  %v325_v1 = vld [vmem:[#allocation4 + $0x78] sm:$0xff] }
   0xd   : > { %298 = vst.msk [vmem:[#allocation2 + $0x8] sm:$0xff] %vm296_vm0, %v802_v0  ;;  %v324_v2 = vld [vmem:[#allocation4 + $0x70] sm:$0xff]  ;;  %340 = vmatpush.msra.mxu2 %v325_v1  ;;  %v316_v3 = vld [vmem:[#allocation4 + $0x38] sm:$0xff]  ;;  %v323_v4 = vld [vmem:[#allocation4 + $0x68] sm:$0xff]  ;;  %vm356_vm1 = vcmask 1040384   ;;  %vm399_vm2 = vcmask 1046528  }
   0xe   : > { %s1061_s28 = smov (!%p286_p6, %s678_s28), 1  ;;  %297 = vst.msk [vmem:[#allocation2] sm:$0xff] %vm296_vm0, %v802_v0  ;;  %374 = vmatpush.msra.mxu1 %v316_v3  ;;  %v315_v5 = vld [vmem:[#allocation4 + $0x30] sm:$0xff]  ;;  %v314_v6 = vld [vmem:[#allocation4 + $0x28] sm:$0xff]  ;;  %v322_v7 = vld [vmem:[#allocation4 + $0x60] sm:$0xff] }
   0xf   : > { %299 = vst.msk [vmem:[#allocation2 + $0x10] sm:$0xff] %vm296_vm0, %v802_v0  ;;  %s729_s10 = sshll.u32 %s1061_s28, 4  ;;  %341 = vmatpush.msra.mxu2 %v324_v2  ;;  %v313_v9 = vld [vmem:[#allocation4 + $0x20] sm:$0xff]  ;;  %v321_v10 = vld [vmem:[#allocation4 + $0x58] sm:$0xff]  ;;  %v320_v14 = vld [vmem:[#allocation4 + $0x50] sm:$0xff] }
  0x10   : > { %300 = vst.msk [vmem:[#allocation2 + $0x18] sm:$0xff] %vm296_vm0, %v802_v0  ;;  %s290_s13 = scalar_lea.vmem %s1052_s0, %s729_s10  ;;  %375 = vmatpush.msra.mxu1 %v315_v5  ;;  %v312_v11 = vld [vmem:[#allocation4 + $0x18] sm:$0xff]  ;;  %v319_v15 = vld [vmem:[#allocation4 + $0x48] sm:$0xff]  ;;  %v311_v16 = vld [vmem:[#allocation4 + $0x10] sm:$0xff]  ;;  %s295_s20 = scalar_lea.vmem %s1059_s7, %s729_s10 }
  0x11   : > { %v301_v8 = vld [vmem:[%s290_s13] sm:$0xff]  ;;  %342 = vmatpush.msra.mxu2 %v323_v4  ;;  %v302_v13 = vld [vmem:[%s290_s13 + $0x8] sm:$0xff]  ;;  %v710_v18 = vld [vmem:[%s1054_s2 + $0xf8] sm:$0xff] }
  0x12   : > { %303 = vst.msk [vmem:[#allocation2 + $0x8] sm:$0xff] %vm296_vm0, %v301_v8  ;;  %376 = vmatpush.msra.mxu1 %v314_v6  ;;  %v310_v17 = vld [vmem:[#allocation4 + $0x8] sm:$0xff]  ;;  %v709_v19 = vld [vmem:[%s1054_s2 + $0xf0] sm:$0xff]  ;;  %491 = vmatpush.msra.mxu3 %v710_v18  ;;  %v473_v21 = vld [vmem:[%s1054_s2 + $0x78] sm:$0xff] }
  0x13   : > { %343 = vmatpush.msra.mxu2 %v322_v7  ;;  %304 = vst.msk [vmem:[#allocation2 + $0x10] sm:$0xff] %vm296_vm0, %v302_v13  ;;  %v708_v22 = vld [vmem:[%s1054_s2 + $0xe8] sm:$0xff]  ;;  %v472_v23 = vld [vmem:[%s1054_s2 + $0x70] sm:$0xff]  ;;  %524 = vmatpush.msra.mxu0 %v473_v21  ;;  %v318_v24 = vld [vmem:[#allocation4 + $0x40] sm:$0xff] }
  0x14   : > { %377 = vmatpush.msra.mxu1 %v313_v9  ;;  %492 = vmatpush.msra.mxu3 %v709_v19  ;;  %v309_v27 = vld [vmem:[#allocation4] sm:$0xff]  ;;  %v397_v28 = vld [vmem:[#allocation4 + $0xb8] sm:$0xff]  ;;  %v396_v30 = vld [vmem:[#allocation4 + $0xb0] sm:$0xff] }
  0x15   : > { %v305_v12 = vld [vmem:[#allocation2] sm:$0xff]  ;;  %344 = vmatpush.msra.mxu2 %v321_v10  ;;  %525 = vmatpush.msra.mxu0 %v472_v23  ;;  %v395_v32 = vld [vmem:[#allocation4 + $0xa8] sm:$0xff]  ;;  %v393_v35 = vld [vmem:[#allocation4 + $0x98] sm:$0xff] }
  0x16   : > { %378 = vmatpush.msra.mxu1 %v312_v11  ;;  %v357_v20 = vrot.slane %v305_v12, 7  ;;  %493 = vmatpush.msra.mxu3 %v708_v22  ;;  %v394_v34 = vld [vmem:[#allocation4 + $0xa0] sm:$0xff]  ;;  %v392_v37 = vld [vmem:[#allocation4 + $0x90] sm:$0xff]  ;;  %v391_v40 = vld [vmem:[#allocation4 + $0x88] sm:$0xff] }
  0x17   : > { %345 = vmatpush.msra.mxu2 %v320_v14  ;;  %v390_v41 = vld [vmem:[#allocation4 + $0x80] sm:$0xff]  ;;  %v308_v43 = vld [vmem:[#allocation2 + $0x18] sm:$0xff]  ;;  %v471_v47 = vld [vmem:[%s1054_s2 + $0x68] sm:$0xff] }
  0x18   : > { %379 = vmatpush.msra.mxu1 %v311_v16  ;;  %v403_v44 = vrot.slane %v308_v43, 1  ;;  %v707_v46 = vld [vmem:[%s1054_s2 + $0xe0] sm:$0xff]  ;;  %526 = vmatpush.msra.mxu0 %v471_v47  ;;  %v706_v48 = vld [vmem:[%s1054_s2 + $0xd8] sm:$0xff]  ;;  %v705_v50 = vld [vmem:[%s1054_s2 + $0xd0] sm:$0xff] }
  0x19   : > { %v306_v25 = vld [vmem:[#allocation2 + $0x8] sm:$0xff]  ;;  %346 = vmatpush.msra.mxu2 %v319_v15  ;;  %494 = vmatpush.msra.mxu3 %v707_v46  ;;  %v470_v49 = vld [vmem:[%s1054_s2 + $0x60] sm:$0xff]  ;;  %v469_v51 = vld [vmem:[%s1054_s2 + $0x58] sm:$0xff] }
  0x1a   : > { %v358_v26 = vrot.slane %v306_v25, 7  ;;  %380 = vmatpush.msra.mxu1 %v310_v17  ;;  %v307_v31 = vld [vmem:[#allocation2 + $0x10] sm:$0xff]  ;;  %v400_v38 = vrot.slane %v306_v25, 1  ;;  %v726_v52 = vld [vmem:[%s1054_s2 + $0x178] sm:$0xff]  ;;  %527 = vmatpush.msra.mxu0 %v470_v49  ;;  %v704_v53 = vld [vmem:[%s1054_s2 + $0xc8] sm:$0xff] }
  0x1b   : > { %347 = vmatpush.msra.mxu2 %v318_v24  ;;  %v360_v33 = vrot.slane %v307_v31, 7  ;;  %v401_v39 = vrot.slane %v307_v31, 1  ;;  %495 = vmatpush.msra.mxu3 %v706_v48  ;;  %v725_v54 = vld [vmem:[%s1054_s2 + $0x170] sm:$0xff]  ;;  %v703_v56 = vld [vmem:[%s1054_s2 + $0xc0] sm:$0xff]  ;;  %v467_v57 = vld [vmem:[%s1054_s2 + $0x48] sm:$0xff] }
  0x1c   : > { %v359_v29 = vsel %vm356_vm1, %v357_v20, %v358_v26  ;;  %689 = vmatmul.msk.f32.vlgmr.msra.gmra.mxu2 %vm296_vm0, %v306_v25  ;;  %381 = vmatpush.msra.mxu1 %v309_v27  ;;  %v468_v55 = vld [vmem:[%s1054_s2 + $0x50] sm:$0xff]  ;;  %v724_v58 = vld [vmem:[%s1054_s2 + $0x168] sm:$0xff]  ;;  %v702_v59 = vld [vmem:[%s1054_s2 + $0xb8] sm:$0xff] }
  0x1d   : > { %417 = vmatpush.msrb.mxu2 %v397_v28  ;;  %691 = vmatmul.msk.f32.vlgmr.msra.gmra.mxu1 %vm296_vm0, %v359_v29  ;;  %v361_v36 = vsel %vm356_vm1, %v358_v26, %v360_v33  ;;  %v402_v42 = vsel %vm399_vm2, %v400_v38, %v401_v39  ;;  %v404_v45 = vsel %vm399_vm2, %v401_v39, %v403_v44  ;;  %v466_v60 = vld [vmem:[%s1054_s2 + $0x40] sm:$0xff]  ;;  %v701_v62 = vld [vmem:[%s1054_s2 + $0xb0] sm:$0xff]  ;;  %v465_v63 = vld [vmem:[%s1054_s2 + $0x38] sm:$0xff]  ;;  %v517_v39 = vrot.slane %v802_v0, 7 }
  0x1e   : > { %572 = vmatpush.msrb.mxu1 %v726_v52  ;;  %496 = vmatpush.msra.mxu3 %v705_v50  ;;  %v723_v61 = vld [vmem:[%s1054_s2 + $0x160] sm:$0xff]  ;;  %v722_v1 = vld [vmem:[%s1054_s2 + $0x158] sm:$0xff]  ;;  %v700_v2 = vld [vmem:[%s1054_s2 + $0xa8] sm:$0xff]  ;;  %v568_v52 = vrot.slane %v802_v0, 1 }
  0x1f   : > { %418 = vmatpush.msrb.mxu2 %v396_v30  ;;  %528 = vmatpush.msra.mxu0 %v469_v51  ;;  %v464_v3 = vld [vmem:[%s1054_s2 + $0x30] sm:$0xff]  ;;  %v699_v5 = vld [vmem:[%s1054_s2 + $0xa0] sm:$0xff]  ;;  %v463_v6 = vld [vmem:[%s1054_s2 + $0x28] sm:$0xff] }
  0x20   : > { %573 = vmatpush.msrb.mxu1 %v725_v54  ;;  %497 = vmatpush.msra.mxu3 %v704_v53  ;;  %v721_v4 = vld [vmem:[%s1054_s2 + $0x150] sm:$0xff]  ;;  %v720_v7 = vld [vmem:[%s1054_s2 + $0x148] sm:$0xff]  ;;  %v698_v8 = vld [vmem:[%s1054_s2 + $0x98] sm:$0xff] }
  0x21   : > { %419 = vmatpush.msrb.mxu2 %v395_v32  ;;  %529 = vmatpush.msra.mxu0 %v468_v55  ;;  %v462_v9 = vld [vmem:[%s1054_s2 + $0x20] sm:$0xff]  ;;  %v697_v11 = vld [vmem:[%s1054_s2 + $0x90] sm:$0xff]  ;;  %v461_v12 = vld [vmem:[%s1054_s2 + $0x18] sm:$0xff] }
  0x22   : > { %498 = vmatpush.msra.mxu3 %v703_v56  ;;  %574 = vmatpush.msrb.mxu1 %v724_v58  ;;  %v719_v10 = vld [vmem:[%s1054_s2 + $0x140] sm:$0xff]  ;;  %v718_v13 = vld [vmem:[%s1054_s2 + $0x138] sm:$0xff]  ;;  %v696_v14 = vld [vmem:[%s1054_s2 + $0x88] sm:$0xff] }
  0x23   : > { %420 = vmatpush.msrb.mxu2 %v394_v34  ;;  %530 = vmatpush.msra.mxu0 %v467_v57  ;;  %v460_v15 = vld [vmem:[%s1054_s2 + $0x10] sm:$0xff]  ;;  %v695_v17 = vld [vmem:[%s1054_s2 + $0x80] sm:$0xff]  ;;  %v459_v18 = vld [vmem:[%s1054_s2 + $0x8] sm:$0xff] }
  0x24   : > { %690 = vmatmul.msk.f32.gmra.mxu2 %vm296_vm0, %v307_v31  ;;  %499 = vmatpush.msra.mxu3 %v702_v59  ;;  %v717_v16 = vld [vmem:[%s1054_s2 + $0x130] sm:$0xff]  ;;  %v716_v19 = vld [vmem:[%s1054_s2 + $0x128] sm:$0xff]  ;;  %v458_v20 = vld [vmem:[%s1054_s2] sm:$0xff] }
  0x25   : > { %421 = vmatpush.msrb.mxu2 %v393_v35  ;;  %692 = vmatmul.msk.f32.gmra.mxu1 %vm296_vm0, %v361_v36  ;;  %v715_v21 = vld [vmem:[%s1054_s2 + $0x120] sm:$0xff]  ;;  %v714_v22 = vld [vmem:[%s1054_s2 + $0x118] sm:$0xff]  ;;  %v713_v23 = vld [vmem:[%s1054_s2 + $0x110] sm:$0xff] }
  0x26   : > { %531 = vmatpush.msra.mxu0 %v466_v60  ;;  %575 = vmatpush.msrb.mxu1 %v723_v61  ;;  %v712_v25 = vld [vmem:[%s1054_s2 + $0x108] sm:$0xff]  ;;  %v711_v26 = vld [vmem:[%s1054_s2 + $0x100] sm:$0xff] }
  0x27   : > { %422 = vmatpush.msrb.mxu2 %v392_v37  ;;  %500 = vmatpush.msra.mxu3 %v701_v62  ;;  %v753_v30 = vld [vmem:[%s1055_s3] ss:$0 sm:$0xff] }
  0x28   : > { %532 = vmatpush.msra.mxu0 %v465_v63  ;;  %576 = vmatpush.msrb.mxu1 %v722_v1  ;;  %v754_v33 = vld [vmem:[%s1056_s4] ss:$0 sm:$0xff] }
  0x29   : > { %423 = vmatpush.msrb.mxu2 %v391_v40  ;;  %501 = vmatpush.msra.mxu3 %v700_v2  ;;  %v755_v57 = vld [vmem:[%s1057_s5] ss:$0 sm:$0xff] }
  0x2a   : > { %533 = vmatpush.msra.mxu0 %v464_v3  ;;  %577 = vmatpush.msrb.mxu1 %v721_v4  ;;  %v756_v60 = vld [vmem:[%s1058_s6] ss:$0 sm:$0xff] }
  0x2b   : > { %424 = vmatpush.msrb.mxu2 %v390_v41  ;;  %502 = vmatpush.msra.mxu3 %v699_v5 }
  0x2c   : > { %693 = vmatmul.msk.f32.vlgmr.msrb.gmra.mxu2 %vm296_vm0, %v402_v42  ;;  %534 = vmatpush.msra.mxu0 %v463_v6 }
  0x2d   : > { %578 = vmatpush.msrb.mxu1 %v720_v7  ;;  %503 = vmatpush.msra.mxu3 %v698_v8 }
  0x2e   : > { %535 = vmatpush.msra.mxu0 %v462_v9 }
  0x2f   : > { %579 = vmatpush.msrb.mxu1 %v719_v10  ;;  %504 = vmatpush.msra.mxu3 %v697_v11 }
  0x30   : > { %536 = vmatpush.msra.mxu0 %v461_v12 }
  0x31   : > { %580 = vmatpush.msrb.mxu1 %v718_v13  ;;  %505 = vmatpush.msra.mxu3 %v696_v14 }
  0x32   : > { %537 = vmatpush.msra.mxu0 %v460_v15 }
  0x33   : > { %581 = vmatpush.msrb.mxu1 %v717_v16  ;;  %506 = vmatpush.msra.mxu3 %v695_v17 }
  0x34   : > { %694 = vmatmul.msk.f32.gmra.mxu2 %vm296_vm0, %v404_v45  ;;  %538 = vmatpush.msra.mxu0 %v459_v18 }
  0x35   : > { %582 = vmatpush.msrb.mxu1 %v716_v19 }
  0x36   : > { %539 = vmatpush.msra.mxu0 %v458_v20 }
  0x37   : > { %583 = vmatpush.msrb.mxu1 %v715_v21 }
  0x39   : > { %584 = vmatpush.msrb.mxu1 %v714_v22 }
  0x3b   : > { %585 = vmatpush.msrb.mxu1 %v713_v23 }
  0x3d   : > { %586 = vmatpush.msrb.mxu1 %v712_v25 }
  0x3f   : > { %587 = vmatpush.msrb.mxu1 %v711_v26 }
  0x9a   : > { %v383_v28 = vpop.f32.mrf.mxu1 }
  0x9f   : > { %v349_v24 = vpop.f32.mrf.mxu2 }
  0xa0   : > { %v384_v29 = vadd.f32 %v383_v28, %v349_v24 }
  0xa2   : > { %v386_v35 = vpop.f32.mrf.mxu1 }
  0xa7   : > { %v352_v27 = vpop.f32.mrf.mxu2 }
  0xa8   : > { %v387_v37 = vadd.f32 %v386_v35, %v352_v27 }
  0xaf   : > { %v426_v31 = vpop.f32.mrf.mxu2 }
  0xb0   : > { %v432_v32 = vadd.f32 %v426_v31, %v384_v29 }
  0xb2   : > { %v438_v34 = vmul.f32 %v753_v30, %v432_v32 }
  0xb4   : > { %v444_v36 = vadd.f32 %v754_v33, %v438_v34 }
  0xb6   : > { %v446_v38 = vmax.f32 %v444_v36, 0.0 }
  0xb7   : > { %v429_v40 = vpop.f32.mrf.mxu2 }
  0xb8   : > { %v433_v41 = vadd.f32 %v429_v40, %v387_v37  ;;  %507 = vmatmul.f32.vlgmr.msra.gmra.mxu3 %v446_v38  ;;  %v518_v42 = vrot.slane %v446_v38, 7  ;;  %v565_v48 = vrot.slane %v446_v38, 1 }
  0xba   : > { %v439_v43 = vmul.f32 %v753_v30, %v433_v41  ;;  %v519_v44 = vsel %vm356_vm1, %v517_v39, %v518_v42 }
  0xbb   : > { %540 = vmatmul.f32.vlgmr.msra.gmra.mxu0 %v519_v44 }
  0xbc   : > { %v445_v45 = vadd.f32 %v754_v33, %v439_v43 }
  0xbe   : > { %v447_v46 = vmax.f32 %v445_v45, 0.0 }
  0xc0   : > { %510 = vmatmul.f32.gmra.mxu3 %v447_v46  ;;  %v520_v47 = vrot.slane %v447_v46, 7  ;;  %v566_v49 = vrot.slane %v447_v46, 1 }
  0xc2   : > { %v521_v50 = vsel %vm356_vm1, %v518_v42, %v520_v47  ;;  %v567_v51 = vsel %vm399_vm2, %v565_v48, %v566_v49  ;;  %v569_v53 = vsel %vm399_vm2, %v566_v49, %v568_v52 }
  0xc3   : > { %543 = vmatmul.f32.gmra.mxu0 %v521_v50  ;;  %588 = vmatmul.f32.vlgmr.msrb.gmra.mxu1 %v567_v51 }
  0xcb   : > { %591 = vmatmul.f32.gmra.mxu1 %v569_v53 }
 0x138   : > { %v541_v55 = vpop.f32.mrf.mxu0 }
 0x13b   : > { %v508_v54 = vpop.f32.mrf.mxu3 }
 0x13c   : > { %v542_v56 = vadd.f32 %v541_v55, %v508_v54 }
 0x140   : > { %v589_v58 = vpop.f32.mrf.mxu1  ;;  %v544_v63 = vpop.f32.mrf.mxu0 }
 0x141   : > { %v595_v59 = vadd.f32 %v589_v58, %v542_v56 }
 0x143   : > { %v601_v61 = vmul.f32 %v755_v57, %v595_v59  ;;  %v511_v0 = vpop.f32.mrf.mxu3 }
 0x144   : > { %v545_v1 = vadd.f32 %v544_v63, %v511_v0 }
 0x145   : > { %v607_v62 = vadd.f32 %v756_v60, %v601_v61 }
 0x147   : > { %609 = vst [vmem:[%s295_s20] sm:$0xff] %v607_v62 }
 0x148   : > { %v592_v2 = vpop.f32.mrf.mxu1 }
 0x149   : > { %v596_v3 = vadd.f32 %v592_v2, %v545_v1 }
 0x14b   : > { %v602_v4 = vmul.f32 %v755_v57, %v596_v3 }
 0x14d   : > { %v608_v5 = vadd.f32 %v756_v60, %v602_v4 }
 0x14f   : > { %610 = vst [vmem:[%s295_s20 + $0x8] sm:$0xff] %v608_v5 }
 0x150 PF: > { %s18_s24 = sadd.s32 1, %s797_s24  }
 0x151   : > { %p15_p7 = scmp.ge.s32.totalorder %s18_s24, 4  }
 0x153   :  { %17 = sbr.rel (!%p15_p7) target bundleno = 1 (0x1), region = 87 }
 0x158   :  { %632 = vsyncpa [#allocation5], 1 }
 0x159   :  { %634 = vsyncpa [#allocation5 + $0x1], 1 }

</bundles_post_ra>
